<compile_context>
chip_gen: v7x
topology: tpu7x:2x2x1
jax: 0.10.0
libtpu: 0.0.40
codegen_flags: <defaults>
</compile_context>

<pallas_src>
import numpy as np

import jax
import jax.numpy as jnp
from jax import lax
from jax.experimental import pallas as pl
from jax.experimental.pallas import tpu as pltpu


_NEG = -1e30          # plain Python float: must NOT be a traced jnp constant
_OUT_LANES = 128      # lane-padded width of the fused final MLP layer


def _decoder_kernel(x_ref, batch_ref, wg_ref, bg_ref,
                    wa_ref, ba_ref, wb_ref, bb_ref,
                    out_ref, m_sc, l_sc, acc_sc):
    i = pl.program_id(0)
    tn = x_ref.shape[0]
    nb = acc_sc.shape[0]      # num_scenes

    @pl.when(i == 0)
    def _init():
        m_sc[...] = jnp.full(m_sc.shape, _NEG, jnp.float32)
        l_sc[...] = jnp.zeros(l_sc.shape, jnp.float32)
        acc_sc[...] = jnp.zeros(acc_sc.shape, jnp.float32)

    x = x_ref[...]                                    # [tn, D] compute dtype
    batch = batch_ref[...]                            # [tn, 1] int32, -1 = dropped

    # gate_nn: Linear(D, 1) on the MXU (frees XLU slots for the reductions).
    gate = jnp.dot(x, wg_ref[...],
                   preferred_element_type=jnp.float32) + bg_ref[...]     # [tn, 1]

    # One-hot scene membership (rows with batch == -1 are all-zero).
    seg_ids = lax.broadcasted_iota(jnp.int32, (tn, nb), 1)               # [tn, B]
    valid = seg_ids == batch                                             # [tn, B]
    valid_f = valid.astype(jnp.float32)

    # ---- online per-scene softmax update ----
    gate_m = jnp.where(valid, gate, _NEG)                                # finite
    m_prev = m_sc[...]                                                   # [1, B]
    m_new = jnp.maximum(m_prev, jnp.max(gate_m, axis=0, keepdims=True))  # [1, B]
    alpha = jnp.exp(m_prev - m_new)                                      # [1, B]

    # Per-row scene max (rows are one-hot => sum picks their scene's max).
    m_row = jnp.sum(valid_f * m_new, axis=1, keepdims=True)              # [tn, 1]
    row_valid = batch >= 0                                               # [tn, 1]
    # exp argument <= 0 for valid rows (their gate contributed to m_new);
    # dropped rows are forced to 0 so no inf can leak into the matmul.
    e_row = jnp.where(row_valid, jnp.exp(gate - m_row), 0.0)             # [tn, 1]

    l_sc[...] = alpha * l_sc[...] + jnp.sum(valid_f * e_row, axis=0,
                                            keepdims=True)               # [1, B]

    # Mask-matmul accumulator update: LHS is an exact 0/1 matrix even in bf16;
    # the weighted features e_row*x are rounded once to the compute dtype.
    px = (e_row * x).astype(x.dtype)                                     # [tn, D]
    acc_sc[...] = alpha.T * acc_sc[...] + lax.dot_general(
        valid.astype(x.dtype), px, (((0,), (0,)), ((), ())),
        preferred_element_type=jnp.float32)                              # [B, D]
    m_sc[...] = m_new

    # ---- finalize: divide + fused MLP heads ----
    @pl.when(i == pl.num_programs(0) - 1)
    def _finalize():
        denom = l_sc[...]
        denom = jnp.where(denom > 0.0, denom, 1.0)         # empty-scene guard
        x_scene = acc_sc[...] * (1.0 / denom).T            # [B, D] f32
        x_scene = x_scene.astype(wa_ref.dtype)
        h = jnp.dot(x_scene, wa_ref[...],
                    preferred_element_type=jnp.float32) + ba_ref[...]
        h = jnp.maximum(h, 0.0).astype(wb_ref.dtype)
        out = jnp.dot(h, wb_ref[...],
                      preferred_element_type=jnp.float32) + bb_ref[...]  # [B, 128]
        out_ref[...] = out.astype(out_ref.dtype)


def _vmem_capacity_bytes():
    """Physical per-core VMEM; falls back to 128 MiB if not queryable."""
    try:
        cap = getattr(pltpu.get_tpu_info(), "vmem_capacity_bytes", None)
        if cap:
            return int(cap)
    except Exception:
        pass
    return 128 << 20


def _round_up(v, m):
    return ((v + m - 1) // m) * m


def _tile_rows(n, d, num_scenes, itemsize, target_bytes, row_align):
    """Rows per streamed tile, accounting for the [tn,B] intermediates."""
    # per-row bytes: streamed x (+batch), the f32 weighted-feature intermediate,
    # and ~4 f32 [tn,B]-shaped membership/products intermediates.
    per_row = d * (itemsize + 4) + 4 * num_scenes * 4 + 8
    rows = max(row_align, min(8192, target_bytes // max(1, per_row)))
    rows = (int(rows) // row_align) * row_align
    return min(rows, _round_up(n, row_align))


def _pack_params(params, regress_norm, compute_dtype):
    d = params["w1"].shape[0]
    wg = params["wg"].reshape(d, 1).astype(compute_dtype)
    bg = params["bg"].reshape(1, 1).astype(jnp.float32)
    if regress_norm:
        # Fuse both MLP heads: one [D,2D] layer, one block-diagonal second layer.
        wa = jnp.concatenate([params["w1"], params["w3"]], axis=1)       # [D, 2D]
        ba = jnp.concatenate([params["b1"], params["b3"]], axis=1)       # [1, 2D]
        w2 = params["w2"]
        w4 = params["w4"].reshape(d, 1)
        wb_small = jnp.concatenate(
            [jnp.concatenate([w2, jnp.zeros((d, 1), w2.dtype)], axis=1),
             jnp.concatenate([jnp.zeros((d, 6), w2.dtype), w4], axis=1)],
            axis=0)                                                       # [2D, 7]
        bb_small = jnp.concatenate([params["b2"], params["b4"]], axis=1)  # [1, 7]
        out_dim = 7
    else:
        wa, ba = params["w1"], params["b1"]
        wb_small, bb_small = params["w2"], params["b2"]                   # [D,6],[1,6]
        out_dim = 6
    # Lane-pad the final layer to 128 so the finalize store is a full vst.
    wb = jnp.zeros((wb_small.shape[0], _OUT_LANES), jnp.float32)
    wb = wb.at[:, :out_dim].set(wb_small.astype(jnp.float32))
    bb = jnp.zeros((1, _OUT_LANES), jnp.float32)
    bb = bb.at[:, :out_dim].set(bb_small.astype(jnp.float32))
    return (wg, bg,
            wa.astype(compute_dtype), ba.astype(jnp.float32),
            wb.astype(compute_dtype), bb)


def decoder_forward(x_clu, mask_clu, batch_clu, params, num_scenes,
                    regress_norm=False, compute_dtype=jnp.bfloat16,
                    tile_rows=None):
    n, d = x_clu.shape
    itemsize = jnp.dtype(compute_dtype).itemsize
    row_align = max(8, 32 // itemsize)         # 8 (f32) / 16 (bf16) / 32 (int8)

    vmem_cap = _vmem_capacity_bytes()
    # ~vmem/12 per streamed tile: ~10 MiB on 128-MiB parts, ~5 MiB on v7x.
    target_bytes = int(min(16 << 20, max(4 << 20, vmem_cap // 12)))

    if tile_rows is not None:
        tn = max(row_align, (int(tile_rows) // row_align) * row_align)
    else:
        tn = _tile_rows(n, d, num_scenes, itemsize, target_bytes, row_align)
    n_pad = _round_up(max(n, tn), tn)
    pad = n_pad - n

    x = x_clu.astype(compute_dtype)
    # Fold the validity mask into the batch id: dropped rows -> -1.
    batch_eff = jnp.where(jnp.asarray(mask_clu, bool),
                          jnp.asarray(batch_clu, jnp.int32),
                          jnp.int32(-1)).reshape(n, 1)
    if pad:
        x = jnp.pad(x, ((0, pad), (0, 0)))
        # Padding rows MUST be -1 (not 0) so they never join scene 0.
        batch_eff = jnp.pad(batch_eff, ((0, pad), (0, 0)), constant_values=-1)

    wg, bg, wa, ba, wb, bb = _pack_params(params, regress_norm, compute_dtype)

    in_specs = [
        pl.BlockSpec((tn, d), lambda i: (i, 0)),   # x (streamed, double-buffered)
        pl.BlockSpec((tn, 1), lambda i: (i, 0)),   # effective batch id
    ] + [pl.BlockSpec(w.shape, lambda i: (0, 0))   # weights: constant index_map
         for w in (wg, bg, wa, ba, wb, bb)]
    out_specs = pl.BlockSpec((num_scenes, _OUT_LANES), lambda i: (0, 0))

    # --- VMEM budget: streamed tiles (x2 buffers) + weights (x2) + scratch ---
    def _nbytes(a):
        return int(a.size) * a.dtype.itemsize
    weight_bytes = sum(_nbytes(a) for a in (wg, bg, wa, ba, wb, bb))
    stream_bytes = 2 * (tn * d * itemsize + tn * 4)
    scratch_bytes = 4 * (2 * num_scenes + num_scenes * d)
    interm_bytes = tn * d * 4 + 4 * tn * num_scenes * 4
    need = 2 * weight_bytes + stream_bytes + scratch_bytes + interm_bytes
    # Cap at 75% of physical VMEM (leaves compiler headroom; ~48 MiB on v7x).
    vmem_limit = int(min(vmem_cap * 3 // 4, max(16 << 20, 2 * need)))

    out = pl.pallas_call(
        _decoder_kernel,
        out_shape=jax.ShapeDtypeStruct((num_scenes, _OUT_LANES), jnp.float32),
        grid_spec=pltpu.PrefetchScalarGridSpec(
            num_scalar_prefetch=0,
            grid=(n_pad // tn,),
            in_specs=in_specs,
            out_specs=out_specs,
            scratch_shapes=[pltpu.VMEM((1, num_scenes), jnp.float32),   # running max
                            pltpu.VMEM((1, num_scenes), jnp.float32),   # running denom
                            pltpu.VMEM((num_scenes, d), jnp.float32)]), # running sum
        compiler_params=pltpu.CompilerParams(
            dimension_semantics=("arbitrary",),
            vmem_limit_bytes=vmem_limit),
    )(x, batch_eff, wg, bg, wa, ba, wb, bb)

    vec = out[:, :6]
    norm = out[:, 6:7] if regress_norm else None
    return vec, norm


def init_params(key, d, regress_norm):
    ks = jax.random.split(key, 5)

    def lin(k, fan_in, fan_out):
        lim = 1.0 / np.sqrt(fan_in)
        kw, kb = jax.random.split(k)
        w = jax.random.uniform(kw, (fan_in, fan_out), jnp.float32, -lim, lim)
        b = jax.random.uniform(kb, (1, fan_out), jnp.float32, -lim, lim)
        return w, b

    wg, bg = lin(ks[0], d, 1)                      # gate_nn: Linear(D, 1)
    w1, b1 = lin(ks[1], d, d)                      # vel_si_vec fc0
    w2, b2 = lin(ks[2], d, 6)                      # vel_si_vec fc1
    params = dict(wg=wg, bg=bg, w1=w1, b1=b1, w2=w2, b2=b2)
    if regress_norm:
        w3, b3 = lin(ks[3], d, d)                  # vel_si_norm fc0
        w4, b4 = lin(ks[4], d, 1)                  # vel_si_norm fc1
        params.update(w3=w3, b3=b3, w4=w4, b4=b4)
    return params


def ref_decoder(x, mask, batch, params, num_scenes, regress_norm):
    """Pure numpy reference mimicking torch_geometric AttentionalAggregation + MLP."""
    x = np.asarray(x, np.float32)
    mask = np.asarray(mask, bool)
    batch = np.asarray(batch, np.int64)
    xm = x[mask]
    bm = batch[mask]
    wg = np.asarray(params["wg"]).reshape(-1)
    bg = float(np.asarray(params["bg"]).reshape(()))
    gate = xm @ wg + bg
    x_scene = np.zeros((num_scenes, x.shape[1]), np.float32)
    for s in range(num_scenes):
        sel = bm == s
        if not sel.any():
            continue
        g = gate[sel]
        g = g - g.max()
        a = np.exp(g)
        a = a / a.sum()
        x_scene[s] = (a[:, None] * xm[sel]).sum(0)

    def mlp(z, w1, b1, w2, b2):
        h = z @ np.asarray(w1) + np.asarray(b1)
        h = np.maximum(h, 0.0)
        return h @ np.asarray(w2) + np.asarray(b2)

    vec = mlp(x_scene, params["w1"], params["b1"], params["w2"], params["b2"])
    norm = None
    if regress_norm:
        norm = mlp(x_scene, params["w3"], params["b3"],
                   np.asarray(params["w4"]).reshape(-1, 1), params["b4"])
    return vec, norm


if __name__ == "__main__":
    D = 32           # input_dim
    N = 20           # number of cluster nodes (not a multiple of 8 -> exercises padding)
    B = 2            # number of scenes (batch segments)

    key = jax.random.PRNGKey(0)
    kx, kp = jax.random.split(key)
    x_clu = jax.random.normal(kx, (N, D), jnp.float32)
    batch_np = np.array([0] * (N // 2) + [1] * (N - N // 2), np.int32)
    mask_np = np.ones((N,), bool)
    mask_np[3] = False
    mask_np[14] = False
    batch_clu = jnp.asarray(batch_np)
    mask_clu = jnp.asarray(mask_np)

    for regress_norm in (False, True):
        params = init_params(kp, D, regress_norm)
        vec_ref, norm_ref = ref_decoder(np.asarray(x_clu), mask_np, batch_np,
                                        params, B, regress_norm)
        for compute_dtype, rtol, atol in ((jnp.float32, 1e-4, 1e-4),
                                          (jnp.bfloat16, 5e-2, 5e-2)):
            for tile_rows in (None, 8):      # single-tile and multi-tile online paths
                vec, norm = decoder_forward(x_clu, mask_clu, batch_clu, params, B,
                                            regress_norm=regress_norm,
                                            compute_dtype=compute_dtype,
                                            tile_rows=tile_rows)
                vec = jax.block_until_ready(vec)
                assert np.allclose(np.asarray(vec, np.float32), vec_ref,
                                   rtol=rtol, atol=atol), (
                    f"vec mismatch (regress_norm={regress_norm}, "
                    f"dtype={compute_dtype}, tile={tile_rows})")
                if regress_norm:
                    norm = jax.block_until_ready(norm)
                    assert np.allclose(np.asarray(norm, np.float32), norm_ref,
                                       rtol=rtol, atol=atol), (
                        f"norm mismatch (regress_norm={regress_norm}, "
                        f"dtype={compute_dtype}, tile={tile_rows})")
                else:
                    assert norm is None

    print("KERNEL_OK")
</pallas_src>

<mosaic_0001>
module attributes {stable_mosaic.version = 11 : i64} {
  func.func @_decoder_kernel(%arg0: i32, %arg1: memref<24x32xf32, #tpu.memory_space<vmem>>, %arg2: memref<24x1xi32, #tpu.memory_space<vmem>>, %arg3: memref<32x1xf32, #tpu.memory_space<vmem>>, %arg4: memref<1x1xf32, #tpu.memory_space<vmem>>, %arg5: memref<32x32xf32, #tpu.memory_space<vmem>>, %arg6: memref<1x32xf32, #tpu.memory_space<vmem>>, %arg7: memref<32x128xf32, #tpu.memory_space<vmem>>, %arg8: memref<1x128xf32, #tpu.memory_space<vmem>>, %arg9: memref<2x128xf32, #tpu.memory_space<vmem>>, %arg10: memref<1x2xf32, #tpu.memory_space<vmem>>, %arg11: memref<1x2xf32, #tpu.memory_space<vmem>>, %arg12: memref<2x32xf32, #tpu.memory_space<vmem>>) attributes {dimension_semantics = [#tpu.dimension_semantics<arbitrary>], iteration_bounds = array<i64: 1>, scalar_prefetch = 0 : i64, scratch_operands = 3 : i64, tpu.core_type = #tpu.core_type<tc>, window_params = [{transform_indices = @transform_0, window_bounds = array<i64: 24, 32>}, {transform_indices = @transform_1, window_bounds = array<i64: 24, 1>}, {pipeline_mode = #tpu.pipeline_mode<synchronous>, transform_indices = @transform_2, window_bounds = array<i64: 32, 1>}, {pipeline_mode = #tpu.pipeline_mode<synchronous>, transform_indices = @transform_3, window_bounds = array<i64: 1, 1>}, {pipeline_mode = #tpu.pipeline_mode<synchronous>, transform_indices = @transform_4, window_bounds = array<i64: 32, 32>}, {pipeline_mode = #tpu.pipeline_mode<synchronous>, transform_indices = @transform_5, window_bounds = array<i64: 1, 32>}, {pipeline_mode = #tpu.pipeline_mode<synchronous>, transform_indices = @transform_6, window_bounds = array<i64: 32, 128>}, {pipeline_mode = #tpu.pipeline_mode<synchronous>, transform_indices = @transform_7, window_bounds = array<i64: 1, 128>}, {pipeline_mode = #tpu.pipeline_mode<synchronous>, transform_indices = @transform_8, window_bounds = array<i64: 2, 128>}]} {
    %c0_i32 = arith.constant 0 : i32
    %0 = arith.cmpi eq, %arg0, %c0_i32 : i32
    %1 = arith.extui %0 : i1 to i32
    %c0_i32_0 = arith.constant 0 : i32
    %2 = arith.cmpi ne, %1, %c0_i32_0 : i32
    scf.if %2 {
      %cst_29 = arith.constant -1.000000e+30 : f32
      %58 = vector.broadcast %cst_29 : f32 to vector<1x2xf32>
      %c0_30 = arith.constant 0 : index
      %c0_31 = arith.constant 0 : index
      %59 = vector.load %arg10[%c0_30, %c0_31] : memref<1x2xf32, #tpu.memory_space<vmem>>, vector<1x2xf32>
      tpu.vector_store %arg10[%c0_30, %c0_31], %58 {strides = array<i32>} : memref<1x2xf32, #tpu.memory_space<vmem>>, vector<1x2xf32>,
      %cst_32 = arith.constant 0.000000e+00 : f32
      %60 = vector.broadcast %cst_32 : f32 to vector<1x2xf32>
      %c0_33 = arith.constant 0 : index
      %c0_34 = arith.constant 0 : index
      %61 = vector.load %arg11[%c0_33, %c0_34] : memref<1x2xf32, #tpu.memory_space<vmem>>, vector<1x2xf32>
      tpu.vector_store %arg11[%c0_33, %c0_34], %60 {strides = array<i32>} : memref<1x2xf32, #tpu.memory_space<vmem>>, vector<1x2xf32>,
      %cst_35 = arith.constant 0.000000e+00 : f32
      %62 = vector.broadcast %cst_35 : f32 to vector<2x32xf32>
      %c0_36 = arith.constant 0 : index
      %c0_37 = arith.constant 0 : index
      %63 = vector.load %arg12[%c0_36, %c0_37] : memref<2x32xf32, #tpu.memory_space<vmem>>, vector<2x32xf32>
      tpu.vector_store %arg12[%c0_36, %c0_37], %62 {strides = array<i32>} : memref<2x32xf32, #tpu.memory_space<vmem>>, vector<2x32xf32>,
    } else {
    }
    %c0 = arith.constant 0 : index
    %c0_1 = arith.constant 0 : index
    %3 = vector.load %arg1[%c0, %c0_1] : memref<24x32xf32, #tpu.memory_space<vmem>>, vector<24x32xf32>
    %c0_2 = arith.constant 0 : index
    %c0_3 = arith.constant 0 : index
    %4 = vector.load %arg2[%c0_2, %c0_3] : memref<24x1xi32, #tpu.memory_space<vmem>>, vector<24x1xi32>
    %c0_4 = arith.constant 0 : index
    %c0_5 = arith.constant 0 : index
    %5 = vector.load %arg3[%c0_4, %c0_5] : memref<32x1xf32, #tpu.memory_space<vmem>>, vector<32x1xf32>
    %cst = arith.constant dense<0.000000e+00> : vector<24x1xf32>
    %6 = tpu.matmul %3, %5, %cst {dimension_numbers = #tpu.dot_dimension_numbers<[1], [0], [0], [1], [0, 0, 1, 1], [], []>} : vector<24x32xf32>, vector<32x1xf32>, vector<24x1xf32> -> vector<24x1xf32>
    %c0_6 = arith.constant 0 : index
    %c0_7 = arith.constant 0 : index
    %7 = vector.load %arg4[%c0_6, %c0_7] : memref<1x1xf32, #tpu.memory_space<vmem>>, vector<1x1xf32>
    %8 = vector.broadcast %7 : vector<1x1xf32> to vector<24x1xf32>
    %9 = arith.addf %6, %8 : vector<24x1xf32>
    %10 = tpu.iota {dimensions = array<i32: 1>} : vector<24x2xi32>
    %11 = vector.broadcast %4 : vector<24x1xi32> to vector<24x2xi32>
    %12 = arith.cmpi eq, %10, %11 : vector<24x2xi32>
    %13 = arith.extui %12 : vector<24x2xi1> to vector<24x2xi32>
    %14 = arith.sitofp %13 : vector<24x2xi32> to vector<24x2xf32>
    %cst_8 = arith.constant -1.000000e+30 : f32
    %15 = vector.shape_cast %9 : vector<24x1xf32> to vector<24x1xf32>
    %16 = vector.broadcast %15 : vector<24x1xf32> to vector<24x2xf32>
    %17 = vector.broadcast %cst_8 : f32 to vector<24x2xf32>
    %18 = arith.select %12, %16, %17 : vector<24x2xi1>, vector<24x2xf32>
    %c0_9 = arith.constant 0 : index
    %c0_10 = arith.constant 0 : index
    %19 = vector.load %arg10[%c0_9, %c0_10] : memref<1x2xf32, #tpu.memory_space<vmem>>, vector<1x2xf32>
    %cst_11 = arith.constant dense<0xFF800000> : vector<2xf32>
    %20 = vector.multi_reduction <maximumf>, %18, %cst_11 [0] : vector<24x2xf32> to vector<2xf32>
    %21 = vector.shape_cast %20 : vector<2xf32> to vector<1x2xf32>
    %22 = arith.maximumf %19, %21 : vector<1x2xf32>
    %23 = arith.subf %19, %22 : vector<1x2xf32>
    %24 = math.exp %23 : vector<1x2xf32>
    %25 = vector.broadcast %22 : vector<1x2xf32> to vector<24x2xf32>
    %26 = arith.mulf %14, %25 : vector<24x2xf32>
    %cst_12 = arith.constant dense<0.000000e+00> : vector<24xf32>
    %27 = vector.multi_reduction <add>, %26, %cst_12 [1] : vector<24x2xf32> to vector<24xf32>
    %28 = vector.shape_cast %27 : vector<24xf32> to vector<24x1xf32>
    %c0_i32_13 = arith.constant 0 : i32
    %29 = vector.broadcast %c0_i32_13 : i32 to vector<24x1xi32>
    %30 = arith.cmpi sge, %4, %29 : vector<24x1xi32>
    %31 = arith.subf %9, %28 : vector<24x1xf32>
    %32 = math.exp %31 : vector<24x1xf32>
    %cst_14 = arith.constant 0.000000e+00 : f32
    %33 = vector.broadcast %cst_14 : f32 to vector<24x1xf32>
    %34 = arith.select %30, %32, %33 : vector<24x1xi1>, vector<24x1xf32>
    %c0_15 = arith.constant 0 : index
    %c0_16 = arith.constant 0 : index
    %35 = vector.load %arg11[%c0_15, %c0_16] : memref<1x2xf32, #tpu.memory_space<vmem>>, vector<1x2xf32>
    %36 = arith.mulf %24, %35 : vector<1x2xf32>
    %37 = vector.broadcast %34 : vector<24x1xf32> to vector<24x2xf32>
    %38 = arith.mulf %14, %37 : vector<24x2xf32>
    %cst_17 = arith.constant dense<0.000000e+00> : vector<2xf32>
    %39 = vector.multi_reduction <add>, %38, %cst_17 [0] : vector<24x2xf32> to vector<2xf32>
    %40 = vector.shape_cast %39 : vector<2xf32> to vector<1x2xf32>
    %41 = arith.addf %36, %40 : vector<1x2xf32>
    %c0_18 = arith.constant 0 : index
    %c0_19 = arith.constant 0 : index
    %42 = vector.load %arg11[%c0_18, %c0_19] : memref<1x2xf32, #tpu.memory_space<vmem>>, vector<1x2xf32>
    tpu.vector_store %arg11[%c0_18, %c0_19], %41 {strides = array<i32>} : memref<1x2xf32, #tpu.memory_space<vmem>>, vector<1x2xf32>,
    %43 = vector.broadcast %34 : vector<24x1xf32> to vector<24x32xf32>
    %44 = arith.mulf %43, %3 : vector<24x32xf32>
    %45 = tpu.transpose %24, [1, 0] : vector<1x2xf32> -> vector<2x1xf32>
    %c0_20 = arith.constant 0 : index
    %c0_21 = arith.constant 0 : index
    %46 = vector.load %arg12[%c0_20, %c0_21] : memref<2x32xf32, #tpu.memory_space<vmem>>, vector<2x32xf32>
    %47 = vector.broadcast %45 : vector<2x1xf32> to vector<2x32xf32>
    %48 = arith.mulf %47, %46 : vector<2x32xf32>
    %49 = arith.extui %12 : vector<24x2xi1> to vector<24x2xi32>
    %50 = arith.sitofp %49 : vector<24x2xi32> to vector<24x2xf32>
    %cst_22 = arith.constant dense<0.000000e+00> : vector<2x32xf32>
    %51 = tpu.matmul %50, %44, %cst_22 {dimension_numbers = #tpu.dot_dimension_numbers<[0], [0], [1], [1], [0, 1, 1, 1], [], []>} : vector<24x2xf32>, vector<24x32xf32>, vector<2x32xf32> -> vector<2x32xf32>
    %52 = arith.addf %48, %51 : vector<2x32xf32>
    %c0_23 = arith.constant 0 : index
    %c0_24 = arith.constant 0 : index
    %53 = vector.load %arg12[%c0_23, %c0_24] : memref<2x32xf32, #tpu.memory_space<vmem>>, vector<2x32xf32>
    tpu.vector_store %arg12[%c0_23, %c0_24], %52 {strides = array<i32>} : memref<2x32xf32, #tpu.memory_space<vmem>>, vector<2x32xf32>,
    %c0_25 = arith.constant 0 : index
    %c0_26 = arith.constant 0 : index
    %54 = vector.load %arg10[%c0_25, %c0_26] : memref<1x2xf32, #tpu.memory_space<vmem>>, vector<1x2xf32>
    tpu.vector_store %arg10[%c0_25, %c0_26], %22 {strides = array<i32>} : memref<1x2xf32, #tpu.memory_space<vmem>>, vector<1x2xf32>,
    %c0_i32_27 = arith.constant 0 : i32
    %55 = arith.cmpi eq, %arg0, %c0_i32_27 : i32
    %56 = arith.extui %55 : i1 to i32
    %c0_i32_28 = arith.constant 0 : i32
    %57 = arith.cmpi ne, %56, %c0_i32_28 : i32
    scf.if %57 {
      %c0_29 = arith.constant 0 : index
      %c0_30 = arith.constant 0 : index
      %58 = vector.load %arg11[%c0_29, %c0_30] : memref<1x2xf32, #tpu.memory_space<vmem>>, vector<1x2xf32>
      %cst_31 = arith.constant 0.000000e+00 : f32
      %59 = vector.broadcast %cst_31 : f32 to vector<1x2xf32>
      %60 = arith.cmpf ogt, %58, %59 : vector<1x2xf32>
      %cst_32 = arith.constant 1.000000e+00 : f32
      %61 = vector.broadcast %cst_32 : f32 to vector<1x2xf32>
      %62 = arith.select %60, %58, %61 : vector<1x2xi1>, vector<1x2xf32>
      %c0_33 = arith.constant 0 : index
      %c0_34 = arith.constant 0 : index
      %63 = vector.load %arg12[%c0_33, %c0_34] : memref<2x32xf32, #tpu.memory_space<vmem>>, vector<2x32xf32>
      %cst_35 = arith.constant 1.000000e+00 : f32
      %64 = vector.broadcast %cst_35 : f32 to vector<1x2xf32>
      %65 = arith.divf %64, %62 : vector<1x2xf32>
      %66 = tpu.transpose %65, [1, 0] : vector<1x2xf32> -> vector<2x1xf32>
      %67 = vector.broadcast %66 : vector<2x1xf32> to vector<2x32xf32>
      %68 = arith.mulf %63, %67 : vector<2x32xf32>
      %c0_36 = arith.constant 0 : index
      %c0_37 = arith.constant 0 : index
      %69 = vector.load %arg5[%c0_36, %c0_37] : memref<32x32xf32, #tpu.memory_space<vmem>>, vector<32x32xf32>
      %cst_38 = arith.constant dense<0.000000e+00> : vector<2x32xf32>
      %70 = tpu.matmul %68, %69, %cst_38 {dimension_numbers = #tpu.dot_dimension_numbers<[1], [0], [0], [1], [0, 0, 1, 1], [], []>} : vector<2x32xf32>, vector<32x32xf32>, vector<2x32xf32> -> vector<2x32xf32>
      %c0_39 = arith.constant 0 : index
      %c0_40 = arith.constant 0 : index
      %71 = vector.load %arg6[%c0_39, %c0_40] : memref<1x32xf32, #tpu.memory_space<vmem>>, vector<1x32xf32>
      %72 = vector.broadcast %71 : vector<1x32xf32> to vector<2x32xf32>
      %73 = arith.addf %70, %72 : vector<2x32xf32>
      %cst_41 = arith.constant 0.000000e+00 : f32
      %74 = vector.broadcast %cst_41 : f32 to vector<2x32xf32>
      %75 = arith.maximumf %73, %74 : vector<2x32xf32>
      %c0_42 = arith.constant 0 : index
      %c0_43 = arith.constant 0 : index
      %76 = vector.load %arg7[%c0_42, %c0_43] : memref<32x128xf32, #tpu.memory_space<vmem>>, vector<32x128xf32>
      %cst_44 = arith.constant dense<0.000000e+00> : vector<2x128xf32>
      %77 = tpu.matmul %75, %76, %cst_44 {dimension_numbers = #tpu.dot_dimension_numbers<[1], [0], [0], [1], [0, 0, 1, 1], [], []>} : vector<2x32xf32>, vector<32x128xf32>, vector<2x128xf32> -> vector<2x128xf32>
      %c0_45 = arith.constant 0 : index
      %c0_46 = arith.constant 0 : index
      %78 = vector.load %arg8[%c0_45, %c0_46] : memref<1x128xf32, #tpu.memory_space<vmem>>, vector<1x128xf32>
      %79 = vector.broadcast %78 : vector<1x128xf32> to vector<2x128xf32>
      %80 = arith.addf %77, %79 : vector<2x128xf32>
      %c0_47 = arith.constant 0 : index
      %c0_48 = arith.constant 0 : index
      %81 = vector.load %arg9[%c0_47, %c0_48] : memref<2x128xf32, #tpu.memory_space<vmem>>, vector<2x128xf32>
      tpu.vector_store %arg9[%c0_47, %c0_48], %80 {strides = array<i32>} : memref<2x128xf32, #tpu.memory_space<vmem>>, vector<2x128xf32>,
    } else {
    }
    return
  }
  func.func @transform_0(%arg0: i32) -> (i32, i32) {
    %c0_i32 = arith.constant 0 : i32
    %c0_i32_0 = arith.constant 0 : i32
    return %arg0, %c0_i32 : i32, i32
  }
  func.func @transform_1(%arg0: i32) -> (i32, i32) {
    %c0_i32 = arith.constant 0 : i32
    %c0_i32_0 = arith.constant 0 : i32
    return %arg0, %c0_i32 : i32, i32
  }
  func.func @transform_2(%arg0: i32) -> (i32, i32) {
    %c0_i32 = arith.constant 0 : i32
    %c0_i32_0 = arith.constant 0 : i32
    %c0_i32_1 = arith.constant 0 : i32
    return %c0_i32, %c0_i32_0 : i32, i32
  }
  func.func @transform_3(%arg0: i32) -> (i32, i32) {
    %c0_i32 = arith.constant 0 : i32
    %c0_i32_0 = arith.constant 0 : i32
    %c0_i32_1 = arith.constant 0 : i32
    return %c0_i32, %c0_i32_0 : i32, i32
  }
  func.func @transform_4(%arg0: i32) -> (i32, i32) {
    %c0_i32 = arith.constant 0 : i32
    %c0_i32_0 = arith.constant 0 : i32
    %c0_i32_1 = arith.constant 0 : i32
    return %c0_i32, %c0_i32_0 : i32, i32
  }
  func.func @transform_5(%arg0: i32) -> (i32, i32) {
    %c0_i32 = arith.constant 0 : i32
    %c0_i32_0 = arith.constant 0 : i32
    %c0_i32_1 = arith.constant 0 : i32
    return %c0_i32, %c0_i32_0 : i32, i32
  }
  func.func @transform_6(%arg0: i32) -> (i32, i32) {
    %c0_i32 = arith.constant 0 : i32
    %c0_i32_0 = arith.constant 0 : i32
    %c0_i32_1 = arith.constant 0 : i32
    return %c0_i32, %c0_i32_0 : i32, i32
  }
  func.func @transform_7(%arg0: i32) -> (i32, i32) {
    %c0_i32 = arith.constant 0 : i32
    %c0_i32_0 = arith.constant 0 : i32
    %c0_i32_1 = arith.constant 0 : i32
    return %c0_i32, %c0_i32_0 : i32, i32
  }
  func.func @transform_8(%arg0: i32) -> (i32, i32) {
    %c0_i32 = arith.constant 0 : i32
    %c0_i32_0 = arith.constant 0 : i32
    %c0_i32_1 = arith.constant 0 : i32
    return %c0_i32, %c0_i32_0 : i32, i32
  }
}

</mosaic_0001>

<bundles_post_ra>
// kernel: tpu_custom_call.1
= control target key start
LH: loop header
LB: loop body
LE: loop exit
PB: predicated region body
PF: predicated region fallthrough
CT: control target
= control target key end

     0   :  { %s1050_s0 = inlined_call_operand.hbm [shape: f32[24,32], index: 0, kind: input, shape index: {}]   ;;  %s1051_s1 = inlined_call_operand.vmem [shape: s32[24,1], index: 1, kind: input, shape index: {}]   ;;  %s1052_s2 = inlined_call_operand.vmem [shape: f32[32,1], index: 2, kind: input, shape index: {}]   ;;  %s1053_s3 = inlined_call_operand.<no memory space> [shape: f32[1,1], index: 3, kind: input, shape index: {}]   ;;  %s1054_s4 = inlined_call_operand.vmem [shape: f32[32,32], index: 4, kind: input, shape index: {}]   ;;  %s1055_s5 = inlined_call_operand.vmem [shape: f32[1,32], index: 5, kind: input, shape index: {}]   ;;  %s1056_s6 = inlined_call_operand.vmem [shape: f32[32,128], index: 6, kind: input, shape index: {}]   ;;  %s1057_s7 = inlined_call_operand.vmem [shape: f32[1,128], index: 7, kind: input, shape index: {}]   ;;  %s1058_s8 = inlined_call_operand.hbm [shape: f32[2,128], index: 8, kind: output, shape index: {}]  }
   0x1   :  { %v13_v0 = vstv %s1053_s3 }
   0x2   :  { %14 = vst [vmem:[#allocation5] sm:$0x1] %v13_v0 }
   0x3   :  { %15 = vsyncpa [#allocation7], 0 }
   0x4   :  { %16 = vsyncpa [#allocation8], 0  ;;  %s839_s29 = smov [#allocation6]   ;;  %s791_s11 = scalar_lea.hbm %s1050_s0, 384 }
   0x5   :  { %s22_s30 = sshll.u32 %s839_s29, 4  ;;  %p792_p0 = scmp.ne.s32.totalorder %s1050_s0, %s791_s11  ;;  %s23_s30 = int_to_ptr.vmem [resolvable:$true] %s22_s30 }
   0x6   :  { %p795_p1 = scmp.lt.u32.totalorder %s791_s11, %s1050_s0 }
   0x8   :  { %p797_p2 = pnand %p795_p1, %p792_p0 }
   0xa   :  { %800 = shalt.err (!%p797_p2)
}
   0xb   :  { %s801_s3 = scalar_lea.vmem %s23_s30, 384  ;;  %p806_p4 = scmp.lt.s32.totalorder %s23_s30, %s23_s30 }
   0xc   :  { %p802_p3 = scmp.ne.s32.totalorder %s23_s30, %s801_s3  ;;  %p807_p5 = scmp.lt.s32.totalorder %s801_s3, %s801_s3 }
   0xe   :  { %p808_p6 = por %p807_p5, %p806_p4 }
  0x10   :  { %p809_p7 = pnand %p808_p6, %p802_p3 }
  0x12   :  { %812 = shalt.err (!%p809_p7)
}
  0x13   :  { %s840_s16 = smov 128   ;;  %s841_s17 = smov 8  }
  0x14   :  { %28 = dma.hbm_to_vmem [thread:$0]  %s1050_s0, 384, %s23_s30, [#allocation7], %s840_s16, %s840_s16, %s841_s17  }
  0x15   :  { %835 = dma.done.wait [#allocation7], 384  }
  0x16   :  { %836 = vsyncadd [#allocation7], 4294966912  ;;  %v842_v1 = vmov 0.0|0.0   ;;  %vm843_vm0 = vmmov 0   ;;  %v844_v2 = vmov 0.0   ;;  %v845_v3 = vmov 0  }
  0x17   :  { %749 = vmatprep.subr.bf16.mxu0 %v842_v1  ;;  %709 = vmatprep.mubr.msk.f32.mxu0 %vm843_vm0, %v844_v2  ;;  %v61_v4 = vld [vmem:[%s1052_s2] sm:$0xff]  ;;  %v62_v5 = vld [vmem:[%s1052_s2 + $0x8] sm:$0xff]  ;;  %v63_v6 = vld [vmem:[%s1052_s2 + $0x10] sm:$0xff]  ;;  %vm72_vm1 = vcmask 261120   ;;  %vm50_vm2 = vcmask 8192   ;;  %v162_v28 = vlaneseq  ;;  %vm201_vm5 = vcmask 15360  }
  0x18   :  { %779 = vset.pattern.permute.xlu0 %v845_v3  ;;  %780 = vset.pattern.permute.xlu1 %v845_v3  ;;  %v750_v7 = vpack.c.bf16 %v62_v5, %v61_v4  ;;  %v64_v8 = vld [vmem:[%s1052_s2 + $0x18] sm:$0xff]  ;;  %v929_v9 = vld [vmem:[%s1051_s1] sm:$0xff]  ;;  %v936_v11 = vld [vmem:[%s1051_s1 + $0x8] sm:$0xff]  ;;  %v846_v26 = vmov -1e+30   ;;  %vm358_vm10 = vcmask 195584  }
  0x19   :  { %755 = vmatprep.subr.bf16.mxu1 %v842_v1  ;;  %724 = vmatprep.mubr.msk.f32.mxu1 %vm843_vm0, %v844_v2  ;;  %v753_v10 = vpack.c.bf16 %v64_v8, %v63_v6  ;;  %v938_v12 = vld [vmem:[#allocation6] sm:$0xff]  ;;  %v946_v13 = vld [vmem:[#allocation6 + $0x8] sm:$0xff]  ;;  %v952_v14 = vld [vmem:[#allocation6 + $0x10] sm:$0xff]  ;;  %51 = vst.msk [vmem:[#allocation2] sm:$0x1] %vm50_vm2, %v846_v26  ;;  %v163_v29 = vand.u32 127, %v162_v28 }
  0x1a   :  { %751 = vmatpush3.bf16.msra.mxu0 %v750_v7  ;;  %165 = vperm.xlu0 %779, %v929_v9   ;;  %v961_v15 = vld [vmem:[%s1051_s1 + $0x10] sm:$0xff]  ;;  %v668_v16 = vld [vmem:[#allocation5] ss:$0 sm:$0xff]  ;;  %52 = vst.msk [vmem:[#allocation3] sm:$0x1] %vm50_vm2, %v844_v2  ;;  %v219_v46 = vshrl.u32 %v162_v28, 7 }
  0x1b   :  { %752 = vmatprep.subr.bf16.mxu0 %v842_v1  ;;  %vm236_vm7 = vcmp.ge.s32.totalorder %v936_v11, 0  ;;  %vm235_vm8 = vcmp.ge.s32.totalorder %v929_v9, 0  ;;  %vm237_vm9 = vcmp.ge.s32.totalorder %v961_v15, 0  ;;  %vm53_vm12 = vcmask 254976   ;;  %s847_s25 = smov [#allocation9]  }
  0x1c   :  { %v220_v51 = vsub.s32 0, %v219_v46  ;;  %54 = vst.msk [vmem:[#allocation4] sm:$0x3] %vm53_vm12, %v844_v2  ;;  %s659_s26 = sshll.u32 %s847_s25, 4  ;;  %s660_s26 = int_to_ptr.vmem [resolvable:$true] %s659_s26 }
  0x1d   :  { %s813_s27 = scalar_lea.vmem %s660_s26, 32  ;;  %p818_p9 = scmp.lt.s32.totalorder %s660_s26, %s660_s26 }
  0x1e   :  { %754 = vmatpush3.bf16.msra.mxu0 %v753_v10  ;;  %168 = vperm.xlu0 %779, %v936_v11   ;;  %p814_p8 = scmp.ne.s32.totalorder %s660_s26, %s813_s27  ;;  %p819_p10 = scmp.lt.s32.totalorder %s813_s27, %s813_s27 }
  0x1f   :  { %764 = vmatprep.subr.bf16.mxu0 %v842_v1 }
  0x20   :  { %v200_v49 = vld [vmem:[#allocation2] sm:$0x1]  ;;  %p820_p11 = por %p819_p10, %p818_p9 }
  0x21   :  { %710 = vmatmul.mubr.msk.f32.vlgmr.msra.gmra.mrb[0].mxu0 %vm72_vm1, %v938_v12 }
  0x22   :  { %712 = vmatprep.mubr.msk.f32.mxu0 %vm843_vm0, %v844_v2  ;;  %171 = vperm.xlu0 %779, %v961_v15   ;;  %p821_p12 = pnand %p820_p11, %p814_p8 }
  0x25   :  { %713 = vmatmul.mubr.msk.f32.gmra.mrb[2].mxu0 %vm72_vm1, %v946_v13 }
  0x26   :  { %715 = vmatprep.mubr.msk.f32.mxu0 %vm843_vm0, %v844_v2 }
  0x29   :  { %716 = vmatmul.mubr.msk.f32.gmra.mrb[4].mxu0 %vm72_vm1, %v952_v14 }
  0x2a   :  { %746 = vmatprep.mubr.msk.f32.mxu0 %vm843_vm0, %v844_v2 }
  0x99   :  { %v166_v27 = vpop.permute.xlu0 %165 }
  0x9a   :  { %vm173_vm3 = vcmp.eq.s32.totalorder %v163_v29, %v166_v27 }
  0x9b   :  { %v672_v55 = vsel %vm173_vm3, 1.0, %v844_v2 }
  0x9d   :  { %v169_v30 = vpop.permute.xlu0 %168 }
  0x9e   :  { %vm174_vm4 = vcmp.eq.s32.totalorder %v163_v29, %v169_v30 }
  0x9f   :  { %v673_v56 = vsel %vm174_vm4, 1.0, %v844_v2 }
  0xa1   :  { %v172_v33 = vpop.permute.xlu0 %171 }
  0xa2   :  { %vm175_vm6 = vcmp.eq.s32.totalorder %v163_v29, %v172_v33 }
  0xa3   :  { %v674_v59 = vsel %vm175_vm6, 1.0, %v844_v2 }
  0xf4   :  { %v148_v17 = vpop.f32.mrb[0].mxu0 }
  0xf5   :  { %v964_v18 = vadd.f32 %v668_v16, %v148_v17  ;;  %v711_v19 = vpop.f32.mrb[1].mxu0 }
  0xf7   :  { %184 = vperm.xlu1 %780, %v964_v18  }
  0xf8   :  { %v153_v20 = vpop.f32.mrb[2].mxu0 }
  0xf9   :  { %v154_v21 = vadd.f32 %v668_v16, %v153_v20  ;;  %v714_v22 = vpop.f32.mrb[3].mxu0 }
  0xfb   :  { %189 = vperm.xlu1 %780, %v154_v21  }
  0xfc   :  { %v158_v23 = vpop.f32.mrb[4].mxu0 }
  0xfd   :  { %v159_v24 = vadd.f32 %v668_v16, %v158_v23  ;;  %v717_v25 = vpop.f32.mrb[5].mxu0 }
  0xff   :  { %194 = vperm.xlu1 %780, %v159_v24  }
 0x176   :  { %v185_v31 = vpop.permute.xlu1 %184 }
 0x177   :  { %v197_v34 = vsel %vm173_vm3, %v185_v31, -1e+30 }
 0x178   :  { %v202_v37 = vsel %vm201_vm5, %v197_v34, -inf }
 0x17a   :  { %v190_v32 = vpop.permute.xlu1 %189 }
 0x17b   :  { %v198_v35 = vsel %vm174_vm4, %v190_v32, -1e+30 }
 0x17c   :  { %v203_v36 = vsel %vm201_vm5, %v198_v35, -inf }
 0x17d   :  { %v205_v39 = vmax.f32 %v202_v37, %v203_v36 }
 0x17e   :  { %v195_v38 = vpop.permute.xlu1 %194 }
 0x17f   :  { %v199_v40 = vsel %vm175_vm6, %v195_v38, -1e+30 }
 0x180   :  { %v204_v41 = vsel %vm201_vm5, %v199_v40, -inf }
 0x181   :  { %v206_v42 = vmax.f32 %v205_v39, %v204_v41  ;;  %v250_v39 = vld [vmem:[#allocation3] sm:$0x1] }
 0x183   :  { %v207_v43 = vrot.slane %v206_v42, 4 }
 0x185   :  { %v208_v44 = vmax.f32 %v206_v42, %v207_v43 }
 0x187   :  { %v209_v45 = vrot.slane %v208_v44, 2 }
 0x189   :  { %v210_v47 = vmax.f32 %v208_v44, %v209_v45 }
 0x18b   :  { %v211_v48 = vrot.slane %v210_v47, 1 }
 0x18d   :  { %v212_v50 = vmax.f32 %v210_v47, %v211_v48  ;;  %v483_v48 = vld [vmem:[%s1054_s4] sm:$0xff] }
 0x18f   :  { %v213_v52 = vmax.f32 %v200_v49, %v212_v50  ;;  %v485_v50 = vld [vmem:[%s1054_s4 + $0x10] sm:$0xff] }
 0x191   :  { %v214_v53 = vsub.f32 %v200_v49, %v213_v52  ;;  %435 = vst.msk [vmem:[#allocation2] sm:$0x1] %vm50_vm2, %v213_v52  ;;  %v221_v54 = vrot.slane %v213_v52, %v220_v51  ;;  %v484_v49 = vld [vmem:[%s1054_s4 + $0x8] sm:$0xff] }
 0x192   :  { %v759_v51 = vpack.c.bf16 %v484_v49, %v483_v48 }
 0x193   :  { %v224_v57 = vmul.f32 %v673_v56, %v221_v54  ;;  %v223_v58 = vmul.f32 %v672_v55, %v221_v54  ;;  %v225_v62 = vmul.f32 %v674_v59, %v221_v54  ;;  %v215_v23 = vmul.f32 1.442695, %v214_v53  ;;  %v568_v54 = vld [vmem:[%s1056_s6] sm:$0xff] }
 0x195   :  { %v229_v60 = vsel %vm201_vm5, %v224_v57, 0.0  ;;  %v226_v61 = vsel %vm201_vm5, %v223_v58, 0.0  ;;  %v232_v63 = vsel %vm201_vm5, %v225_v62, 0.0  ;;  %v571_v58 = vld [vmem:[%s1056_s6 + $0x18] sm:$0xff] }
 0x196   :  { %230 = vadd.xlane.f32.xlu1 %v229_v60  ;;  %227 = vadd.xlane.f32.xlu0 %v226_v61  ;;  %v319_v60 = vld [vmem:[#allocation4] sm:$0x3] }
 0x19a   :  { %233 = vadd.xlane.f32.xlu0 %v232_v63 }
 0x223   :  { %v231_v0 = vpop.xlane.xlu1 %230  ;;  %v228_v3 = vpop.xlane.xlu0 %227 }
 0x224   :  { %v239_v4 = vsub.f32 %v154_v21, %v231_v0  ;;  %v238_v5 = vsub.f32 %v964_v18, %v228_v3 }
 0x226   :  { %v243_v6 = vmul.f32 1.442695, %v239_v4  ;;  %v241_v7 = vmul.f32 1.442695, %v238_v5 }
 0x227   :  { %v234_v8 = vpop.xlane.xlu0 %233 }
 0x228   :  { %781 = vpow2.f32 %v243_v6  ;;  %v240_v10 = vsub.f32 %v159_v24, %v234_v8 }
 0x229   :  { %783 = vpow2.f32 %v241_v7  ;;  %v676_v7 = vld [vmem:[%s1055_s5] ss:$0 sm:$0xff] }
 0x22a   :  { %v245_v16 = vmul.f32 1.442695, %v240_v10 }
 0x22c   :  { %785 = vpow2.f32 %v245_v16 }
 0x22d   :  { %787 = vpow2.f32 %v215_v23 }
 0x232   :  { %v782_v17 = vpop.eup %781 }
 0x233   :  { %v784_v19 = vpop.eup %783  ;;  %v248_v20 = vsel %vm236_vm7, %v782_v17, 0.0  ;;  %v678_v17 = vld [vmem:[%s1057_s7] ss:$0 sm:$0xff] }
 0x234   :  { %259 = vperm.xlu1 %780, %v248_v20   ;;  %v247_v22 = vsel %vm235_vm8, %v784_v19, 0.0 }
 0x235   :  { %254 = vperm.xlu0 %779, %v247_v22  }
 0x236   :  { %v786_v18 = vpop.eup %785 }
 0x237   :  { %v249_v21 = vsel %vm237_vm9, %v786_v18, 0.0  ;;  %v788_v24 = vpop.eup %787 }
 0x238   :  { %264 = vperm.xlu1 %780, %v249_v21   ;;  %v251_v41 = vmul.f32 %v788_v24, %v250_v39 }
 0x253   :  { %326 = vxpose.xlu0.b32.start [1/3] (short) (narrow) %v672_v55, 8 }
 0x257   :  { %327 = vxpose.xlu0.b32.cont [2/3] (short) (narrow) %v673_v56, 8 }
 0x25b   :  { %328 = vxpose.xlu0.b32.end [3/3] (short) (narrow) %v674_v59, 8 }
 0x261   :  { %287 = vxpose.xlu1.b32.start.end [1/1] (short) (narrow) %v788_v24, 8 }
 0x2b3   :  { %v260_v11 = vpop.permute.xlu1 %259 }
 0x2b4   :  { %v268_v9 = vmul.f32 %v673_v56, %v260_v11  ;;  %v285_v25 = vmul.f32 %v260_v11, %v946_v13  ;;  %v255_v26 = vpop.permute.xlu0 %254  ;;  %v570_v56 = vld [vmem:[%s1056_s6 + $0x10] sm:$0xff] }
 0x2b5   :  { %v267_v27 = vmul.f32 %v672_v55, %v255_v26  ;;  %v284_v28 = vmul.f32 %v255_v26, %v938_v12  ;;  %v569_v55 = vld [vmem:[%s1056_s6 + $0x8] sm:$0xff] }
 0x2b6   :  { %v271_v15 = vsel %vm201_vm5, %v268_v9, 0.0  ;;  %v765_v57 = vpack.c.bf16 %v569_v55, %v568_v54 }
 0x2b7   :  { %v270_v29 = vsel %vm201_vm5, %v267_v27, 0.0  ;;  %v265_v30 = vpop.permute.xlu1 %264  ;;  %v756_v31 = vpack.c.bf16 %v285_v25, %v284_v28 }
 0x2b8   :  { %v269_v32 = vmul.f32 %v674_v59, %v265_v30  ;;  %v272_v33 = vadd.f32 %v271_v15, %v270_v29  ;;  %v286_v13 = vmul.f32 %v265_v30, %v952_v14  ;;  %766 = vmatpush3.bf16.msra.mxu0 %v765_v57  ;;  %v768_v59 = vpack.c.bf16 %v571_v58, %v570_v56 }
 0x2b9   :  { %757 = vmatpush3.bf16.msra.mxu1 %v756_v31  ;;  %767 = vmatprep.subr.bf16.mxu0 %v842_v1 }
 0x2ba   :  { %v273_v34 = vsel %vm201_vm5, %v269_v32, 0.0  ;;  %722 = vmatprep.subr.mxu1 %v844_v2 }
 0x2bb   :  { %v274_v35 = vadd.f32 %v273_v34, %v272_v33 }
 0x2bc   :  { %769 = vmatpush3.bf16.msra.mxu0 %v768_v59 }
 0x2bd   :  { %v275_v36 = vrot.slane %v274_v35, 4  ;;  %723 = vmatpush3.msra.mxu1 %v286_v13 }
 0x2be   :  { %758 = vmatprep.subr.bf16.mxu1 %v842_v1 }
 0x2bf   :  { %v276_v12 = vadd.f32 %v275_v36, %v274_v35 }
 0x2c1   :  { %v277_v37 = vrot.slane %v276_v12, 2 }
 0x2c3   :  { %v278_v38 = vadd.f32 %v277_v37, %v276_v12 }
 0x2c5   :  { %v279_v40 = vrot.slane %v278_v38, 1 }
 0x2c7   :  { %v280_v42 = vadd.f32 %v279_v40, %v278_v38 }
 0x2c9   :  { %v281_v43 = vadd.f32 %v280_v42, %v251_v41 }
 0x2cb   :  { %283 = vst.msk [vmem:[#allocation3] sm:$0x1] %vm50_vm2, %v281_v43 }
 0x2d2   :  { %v439_v44 = vld [vmem:[#allocation3] sm:$0x1] }
 0x2d3   :  { %v342_v45 = vpop.trf.xlu0  ;;  %vm440_vm11 = vcmp.gt.f32.partialorder %v439_v44, 0.0 }
 0x2d4   :  { %725 = vmatmul.mubr.msk.f32.vlgmr.msra.gmra.mrb[0].mxu1 %vm358_vm10, %v342_v45  ;;  %v441_v14 = vsel %vm440_vm11, %v439_v44, 1.0 }
 0x2d5   :  { %789 = vrcp.f32 %v441_v14  ;;  %735 = vmatprep.mubr.msk.f32.mxu1 %vm843_vm0, %v844_v2  ;;  %v486_v2 = vld [vmem:[%s1054_s4 + $0x18] sm:$0xff]  ;;  %760 = vmatpush3.bf16.msra.mxu1 %v759_v51 }
 0x2d6   :  { %v762_v52 = vpack.c.bf16 %v486_v2, %v485_v50  ;;  %761 = vmatprep.subr.bf16.mxu1 %v842_v1 }
 0x2d9   :  { %763 = vmatpush3.bf16.msra.mxu1 %v762_v52 }
 0x2df   :  { %v790_v46 = vpop.eup %789 }
 0x2e0   :  { %445 = vxpose.xlu0.b32.start.end [1/1] (short) (narrow) %v790_v46, 8 }
 0x2e1   :  { %v303_v47 = vpop.trf.xlu1 }
 0x2e2   :  { %322 = vperm.xlu1 %780, %v303_v47  }
 0x360   :  { %v461_v53 = vpop.trf.xlu0 }
 0x361   :  { %479 = vperm.xlu0 %779, %v461_v53   ;;  %v323_v61 = vpop.permute.xlu1 %322 }
 0x362   :  { %v325_v62 = vmul.f32 %v323_v61, %v319_v60 }
 0x3a7   :  { %v428_v63 = vpop.f32.mrb[0].mxu1 }
 0x3a8   :  { %v432_v0 = vadd.f32 %v428_v63, %v325_v62  ;;  %v726_v3 = vpop.f32.mrb[1].mxu1 }
 0x3aa   :  { %434 = vst.msk [vmem:[#allocation4] sm:$0x3] %vm53_vm12, %v432_v0 }
 0x3b1   :  { %v442_v4 = vld [vmem:[#allocation4] sm:$0x3] }
 0x3e0   :  { %v480_v5 = vpop.permute.xlu0 %479 }
 0x3e1   :  { %v482_v6 = vmul.f32 %v480_v5, %v442_v4 }
 0x3e3   :  { %736 = vmatmul.mubr.msk.f32.vlgmr.msra.gmra.mrb[2].mxu1 %vm72_vm1, %v482_v6 }
 0x4b6   :  { %v563_v8 = vpop.f32.mrb[2].mxu1 }
 0x4b7   :  { %v564_v1 = vadd.f32 %v676_v7, %v563_v8  ;;  %v737_v10 = vpop.f32.mrb[3].mxu1 }
 0x4b9   :  { %v567_v16 = vmax.f32 %v564_v1, 0.0 }
 0x4bb   :  { %747 = vmatmul.mubr.msk.f32.vlgmr.msra.gmra.mrb[6].mxu0 %vm72_vm1, %v567_v16 }
 0x58e   :  { %v648_v19 = vpop.f32.mrb[6].mxu0 }
 0x58f   :  { %v649_v20 = vadd.f32 %v678_v17, %v648_v19  ;;  %v748_v22 = vpop.f32.mrb[7].mxu0 }
 0x591   :  { %652 = vst [vmem:[#allocation9] sm:$0x3] %v649_v20 }
 0x592   :  { %824 = shalt.err (!%p821_p12)
}
 0x593   :  { %s825_s29 = scalar_lea.hbm %s1058_s8, 32 }
 0x594   :  { %p826_p13 = scmp.ne.s32.totalorder %s1058_s8, %s825_s29  ;;  %p829_p0 = scmp.lt.u32.totalorder %s825_s29, %s1058_s8 }
 0x596   :  { %p831_p1 = pnand %p829_p0, %p826_p13 }
 0x598   :  { %834 = shalt.err (!%p831_p1)
}
 0x599   :  { %662 = dma.vmem_to_hbm [thread:$0]  %s660_s26, 32, %s1058_s8, [#allocation8]  }
 0x59a   :  { %837 = dma.done.wait [#allocation8], 32  }
 0x59b   :  { %838 = vsyncadd [#allocation8], 4294967264 }
 0x59c   :  { %666 = vsyncpa [#allocation7], 1 }
 0x59d   :  { %667 = vsyncpa [#allocation8], 1 }

</bundles_post_ra>
